<compile_context>
chip_gen: v5e
topology: v5e:2x2
jax: 0.10.0
libtpu: 0.0.40
codegen_flags: <defaults>
</compile_context>

<pallas_src>
import functools

import jax
import jax.numpy as jnp
from jax.experimental import pallas as pl
from jax.experimental.pallas import tpu as pltpu


_VMEM_LIMIT = 32 * 1024 * 1024  # far above the per-step footprint; safe on v5e/v6e/v7x


# ----------------------------------------------------------------------------- in-kernel helpers


def _dw_same(h, dw_taps, xmask, W, ksize, pad):
    """'Same'-padded stride-1 depthwise conv on a flat (C, H*W) slab.

    Each tap is a static lane shift (zero-filled at the ends) plus a column
    boundary mask; the tap weight is a per-channel (C, 1) column of dw_taps.
    Returns the full-grid (C, H*W) result (stride-2 callers downsample after).
    """
    C, HW = h.shape
    acc = jnp.zeros((C, HW), jnp.float32)
    for dy in range(ksize):
        oy = dy - pad
        for dx in range(ksize):
            ox = dx - pad
            d = oy * W + ox
            if d == 0:
                g = h
            elif d > 0:
                g = jnp.concatenate(
                    [h[:, d:], jnp.zeros((C, d), jnp.float32)], axis=1)
            else:
                g = jnp.concatenate(
                    [jnp.zeros((C, -d), jnp.float32), h[:, :HW + d]], axis=1)
            if ox != 0:
                g = g * xmask[dx:dx + 1, :]            # kill row-boundary wraparound
            g = g * dw_taps[:, dy * ksize + dx:dy * ksize + dx + 1]
            acc = acc + g
    return acc


# ----------------------------------------------------------------------------- kernels


def stride1_kernel(x_ref, xmask_ref, w1_ref, b1_ref, dw_ref, w3_ref, b3_ref,
                   o_ref, *, ksize, pad, W, Bb):
    """stride=1: channel_shuffle split + branch_main + concat, fused.

    Input block is (Bb, inp, 2*H*W) where row m = [channel 2m | channel 2m+1]
    (a free wrapper reshape of contiguous NCHW), so the shuffle halves are
    contiguous 128-aligned lane slices.
    """
    HW = o_ref.shape[2]
    xmask = xmask_ref[...]
    w1 = w1_ref[...]
    b1 = b1_ref[...]
    dw = dw_ref[...]
    w3 = w3_ref[...]
    b3 = b3_ref[...]
    for b in range(Bb):
        xb = x_ref[b]                                   # (inp, 2*HW)
        x_proj = xb[:, :HW]                             # even channels: pass-through half
        x_main = xb[:, HW:]                             # odd channels: branch_main input
        # 1x1 conv (BN1 folded) + ReLU
        h = jnp.maximum(
            jnp.dot(w1, x_main, preferred_element_type=jnp.float32) + b1, 0.0)
        # depthwise kxk, stride 1 (BN2 scale folded into taps)
        acc = _dw_same(h, dw, xmask, W, ksize, pad)
        # 1x1 conv (BN2 bias + BN3 folded) + ReLU
        y = jnp.maximum(
            jnp.dot(w3, acc, preferred_element_type=jnp.float32) + b3, 0.0)
        # concat in registers, single store
        o_ref[b] = jnp.concatenate([x_proj, y], axis=0)


def stride2_kernel(x_ref, xmask_ref, sel_ref,
                   w1_ref, b1_ref, dwm_ref, w3_ref, b3_ref,
                   dwp_ref, wp_ref, bp_ref,
                   o_ref, *, ksize, pad, W, Bb):
    """stride=2: branch_proj + branch_main fused; x read once, concat stored once."""
    xmask = xmask_ref[...]
    sel = sel_ref[...]                                  # (H*W, Hout*Wout) 0/1 downsample
    w1 = w1_ref[...]
    b1 = b1_ref[...]
    dwm = dwm_ref[...]
    w3 = w3_ref[...]
    b3 = b3_ref[...]
    dwp = dwp_ref[...]
    wp = wp_ref[...]
    bp = bp_ref[...]
    for b in range(Bb):
        x = x_ref[b]                                    # (cin, HW) -- shared by both branches

        # ---- branch_proj: dw kxk (s2) -> 1x1 -> ReLU (BN folded) ----
        ap = _dw_same(x, dwp, xmask, W, ksize, pad)     # full grid
        ap = jnp.dot(ap, sel, preferred_element_type=jnp.float32)   # stride-2 pick
        yp = jnp.maximum(
            jnp.dot(wp, ap, preferred_element_type=jnp.float32) + bp, 0.0)

        # ---- branch_main: 1x1 -> ReLU -> dw kxk (s2) -> 1x1 -> ReLU (BN folded) ----
        h = jnp.maximum(
            jnp.dot(w1, x, preferred_element_type=jnp.float32) + b1, 0.0)
        am = _dw_same(h, dwm, xmask, W, ksize, pad)
        am = jnp.dot(am, sel, preferred_element_type=jnp.float32)
        ym = jnp.maximum(
            jnp.dot(w3, am, preferred_element_type=jnp.float32) + b3, 0.0)

        # concat in registers, single store
        o_ref[b] = jnp.concatenate([yp, ym], axis=0)


# ----------------------------------------------------------------------------- pallas wrappers


def _const_spec(a):
    """Full-array block, same block every grid step (weights / masks)."""
    zeros = (0,) * a.ndim
    return pl.BlockSpec(a.shape, lambda b: zeros)


def _pick_block_batch(B, target_steps=8):
    """Largest divisor of B giving >= target_steps grid steps (>=2 when B>=2)."""
    cap = max(1, B // target_steps)
    for bb in range(cap, 0, -1):
        if B % bb == 0:
            return bb
    return 1


def _build_xmask(H, W, ksize, pad):
    """(ksize, H*W) column-validity mask per horizontal tap offset dx."""
    x_pos = jnp.arange(W)
    rows = []
    for dx in range(ksize):
        ox = dx - pad
        m = ((x_pos + ox >= 0) & (x_pos + ox < W)).astype(jnp.float32)
        rows.append(jnp.tile(m, H))
    return jnp.stack(rows)


def _build_downsample_sel(H, W, Hout, Wout):
    """(H*W, Hout*Wout) 0/1 matrix picking input positions (2y, 2x)."""
    src = (2 * jnp.arange(Hout)[:, None] * W + 2 * jnp.arange(Wout)[None, :]).reshape(-1)
    sel = jnp.zeros((H * W, Hout * Wout), jnp.float32)
    return sel.at[src, jnp.arange(Hout * Wout)].set(1.0)


def run_stride1(x_nchw, pm, *, ksize):
    B, C, H, W = x_nchw.shape
    assert ksize % 2 == 1
    inp = C // 2
    HW = H * W
    outputs = pm["w3"].shape[0]
    oup = inp + outputs
    pad = ksize // 2
    Bb = _pick_block_batch(B)

    xmask = _build_xmask(H, W, ksize, pad)
    # Free reshape of contiguous NCHW: row m of length 2*HW = [channel 2m | channel 2m+1],
    # i.e. the channel_shuffle halves become contiguous lane slices inside the kernel.
    x2 = x_nchw.reshape(B, inp, 2 * HW)

    params = (xmask, pm["w1"], pm["b1"], pm["dw"], pm["w3"], pm["b3"])
    kern = functools.partial(stride1_kernel, ksize=ksize, pad=pad, W=W, Bb=Bb)
    out = pl.pallas_call(
        kern,
        out_shape=jax.ShapeDtypeStruct((B, oup, HW), jnp.float32),
        grid=(B // Bb,),
        in_specs=[pl.BlockSpec((Bb, inp, 2 * HW), lambda b: (b, 0, 0))]
                 + [_const_spec(a) for a in params],
        out_specs=pl.BlockSpec((Bb, oup, HW), lambda b: (b, 0, 0)),
        compiler_params=pltpu.CompilerParams(
            dimension_semantics=("parallel",),
            vmem_limit_bytes=_VMEM_LIMIT),
    )(x2, *params)
    return out.reshape(B, oup, H, W)


def run_stride2(x_nchw, pm, pp, *, ksize):
    B, cin, H, W = x_nchw.shape
    assert ksize % 2 == 1
    HW = H * W
    pad = ksize // 2
    Hout = (H + 2 * pad - ksize) // 2 + 1
    Wout = (W + 2 * pad - ksize) // 2 + 1
    outputs = pm["w3"].shape[0]
    oup = cin + outputs
    Bb = _pick_block_batch(B)

    xmask = _build_xmask(H, W, ksize, pad)
    sel = _build_downsample_sel(H, W, Hout, Wout)
    x2 = x_nchw.reshape(B, cin, HW)                     # free reshape

    params = (xmask, sel,
              pm["w1"], pm["b1"], pm["dw"], pm["w3"], pm["b3"],
              pp["dw"], pp["w"], pp["b"])
    kern = functools.partial(stride2_kernel, ksize=ksize, pad=pad, W=W, Bb=Bb)
    out = pl.pallas_call(
        kern,
        out_shape=jax.ShapeDtypeStruct((B, oup, Hout * Wout), jnp.float32),
        grid=(B // Bb,),
        in_specs=[pl.BlockSpec((Bb, cin, HW), lambda b: (b, 0, 0))]
                 + [_const_spec(a) for a in params],
        out_specs=pl.BlockSpec((Bb, oup, Hout * Wout), lambda b: (b, 0, 0)),
        compiler_params=pltpu.CompilerParams(
            dimension_semantics=("parallel",),
            vmem_limit_bytes=_VMEM_LIMIT),
    )(x2, *params)
    return out.reshape(B, oup, Hout, Wout)


# ----------------------------------------------------------------------------- module glue


def fold_bn(gamma, beta, mean, var, eps=1e-5):
    scale = gamma / jnp.sqrt(var + eps)
    bias = beta - mean * scale
    return scale, bias


def prep_main(p):
    """Fold all three BNs of branch_main into conv weights / biases (inference)."""
    s1, b1 = fold_bn(*p["bn1"])
    s2, b2 = fold_bn(*p["bn2"])
    s3, b3 = fold_bn(*p["bn3"])
    w1 = p["w1"][:, :, 0, 0]                            # (mid, inp)
    dw = p["dw"][:, 0]
    dw = dw.reshape(dw.shape[0], -1)                    # (mid, k*k), tap t = dy*k+dx
    w3 = p["w3"][:, :, 0, 0]                            # (outputs, mid)
    w1f = w1 * s1[:, None]
    dwf = dw * s2[:, None]
    w3f = w3 * s3[:, None]
    b3f = b3 + s3 * (w3 @ b2)
    return dict(w1=w1f, b1=b1[:, None], dw=dwf, w3=w3f, b3=b3f[:, None])


def prep_proj(p):
    """Fold both BNs of branch_proj into conv weights / biases (inference)."""
    s1, b1 = fold_bn(*p["bn1"])
    s2, b2 = fold_bn(*p["bn2"])
    dw = p["dw"][:, 0]
    dw = dw.reshape(dw.shape[0], -1)                    # (inp, k*k)
    w = p["w"][:, :, 0, 0]                              # (inp, inp)
    dwf = dw * s1[:, None]
    wf = w * s2[:, None]
    bf = b2 + s2 * (w @ b1)
    return dict(dw=dwf, w=wf, b=bf[:, None])


def shuffle_v2_block(x_nchw, params, *, ksize, stride):
    pm = prep_main(params["main"])
    if stride == 1:
        return run_stride1(x_nchw, pm, ksize=ksize)
    pp = prep_proj(params["proj"])
    return run_stride2(x_nchw, pm, pp, ksize=ksize)


# ----------------------------------------------------------------------------- parameter init


def init_params(key, inp, oup, mid, ksize, stride):
    outputs = oup - inp
    keys = jax.random.split(key, 10)

    def conv_w(k, shape):
        return jax.random.normal(k, shape, jnp.float32) * 0.1

    def bn_params(k, c):
        k1, k2, k3, k4 = jax.random.split(k, 4)
        gamma = jax.random.uniform(k1, (c,), jnp.float32, 0.5, 1.5)
        beta = jax.random.normal(k2, (c,), jnp.float32) * 0.1
        mean = jax.random.normal(k3, (c,), jnp.float32) * 0.1
        var = jax.random.uniform(k4, (c,), jnp.float32, 0.5, 1.5)
        return gamma, beta, mean, var

    params = {
        "main": {
            "w1": conv_w(keys[0], (mid, inp, 1, 1)),
            "bn1": bn_params(keys[1], mid),
            "dw": conv_w(keys[2], (mid, 1, ksize, ksize)),
            "bn2": bn_params(keys[3], mid),
            "w3": conv_w(keys[4], (outputs, mid, 1, 1)),
            "bn3": bn_params(keys[5], outputs),
        }
    }
    if stride == 2:
        params["proj"] = {
            "dw": conv_w(keys[6], (inp, 1, ksize, ksize)),
            "bn1": bn_params(keys[7], inp),
            "w": conv_w(keys[8], (inp, inp, 1, 1)),
            "bn2": bn_params(keys[9], inp),
        }
    return params


# ----------------------------------------------------------------------------- plain-JAX reference


def channel_shuffle(x):
    # exact replica of ShuffleV2Block.channel_shuffle (NCHW)
    b, c, h, w = x.shape
    assert c % 4 == 0
    x = x.reshape(b * c // 2, 2, h * w)
    x = jnp.transpose(x, (1, 0, 2))
    x = x.reshape(2, -1, c // 2, h, w)
    return x[0], x[1]


def torch_conv(x, w, stride, padding, groups):
    return jax.lax.conv_general_dilated(
        x, w, window_strides=(stride, stride),
        padding=((padding, padding), (padding, padding)),
        dimension_numbers=("NCHW", "OIHW", "NCHW"),
        feature_group_count=groups,
        precision=jax.lax.Precision.HIGHEST)


def ref_forward(x, params, *, ksize, stride):
    pad = ksize // 2

    def bn_apply(h, bnp):
        s, b = fold_bn(*bnp)
        return h * s[None, :, None, None] + b[None, :, None, None]

    pm = params["main"]

    def branch_main(h):
        h = torch_conv(h, pm["w1"], 1, 0, 1)
        h = jax.nn.relu(bn_apply(h, pm["bn1"]))
        h = torch_conv(h, pm["dw"], stride, pad, h.shape[1])
        h = bn_apply(h, pm["bn2"])
        h = torch_conv(h, pm["w3"], 1, 0, 1)
        return jax.nn.relu(bn_apply(h, pm["bn3"]))

    if stride == 1:
        x_proj, xm = channel_shuffle(x)
        return jnp.concatenate([x_proj, branch_main(xm)], axis=1)

    pp = params["proj"]

    def branch_proj(h):
        h = torch_conv(h, pp["dw"], stride, pad, h.shape[1])
        h = bn_apply(h, pp["bn1"])
        h = torch_conv(h, pp["w"], 1, 0, 1)
        return jax.nn.relu(bn_apply(h, pp["bn2"]))

    return jnp.concatenate([branch_proj(x), branch_main(x)], axis=1)


# ----------------------------------------------------------------------------- main


if __name__ == "__main__":
    key = jax.random.PRNGKey(0)
    kx1, kp1, kx2, kp2 = jax.random.split(key, 4)

    # --- stride=1 block: forward input has 2*inp channels ---
    inp, oup, mid, ksize = 8, 16, 16, 3
    x1 = jax.random.normal(kx1, (2, 2 * inp, 16, 16), jnp.float32)
    p1 = init_params(kp1, inp, oup, mid, ksize, 1)
    fwd1 = jax.jit(functools.partial(shuffle_v2_block, ksize=ksize, stride=1))
    out1 = jax.block_until_ready(fwd1(x1, p1))
    ref1 = ref_forward(x1, p1, ksize=ksize, stride=1)
    assert out1.shape == (2, oup, 16, 16), out1.shape
    err1 = float(jnp.max(jnp.abs(out1 - ref1)))
    assert err1 < 1e-3, err1

    # --- stride=2 block: forward input has inp channels, spatial halves ---
    inp2, oup2, mid2 = 8, 24, 16
    x2 = jax.random.normal(kx2, (2, inp2, 16, 16), jnp.float32)
    p2 = init_params(kp2, inp2, oup2, mid2, ksize, 2)
    fwd2 = jax.jit(functools.partial(shuffle_v2_block, ksize=ksize, stride=2))
    out2 = jax.block_until_ready(fwd2(x2, p2))
    ref2 = ref_forward(x2, p2, ksize=ksize, stride=2)
    assert out2.shape == (2, oup2, 8, 8), out2.shape
    err2 = float(jnp.max(jnp.abs(out2 - ref2)))
    assert err2 < 1e-3, err2

    print("KERNEL_OK")
</pallas_src>

<mosaic_0001>
module attributes {stable_mosaic.version = 11 : i64} {
  func.func @stride1_kernel(%arg0: i32, %arg1: memref<1x8x512xf32, #tpu.memory_space<vmem>>, %arg2: memref<3x256xf32, #tpu.memory_space<vmem>>, %arg3: memref<16x8xf32, #tpu.memory_space<vmem>>, %arg4: memref<16x1xf32, #tpu.memory_space<vmem>>, %arg5: memref<16x9xf32, #tpu.memory_space<vmem>>, %arg6: memref<8x16xf32, #tpu.memory_space<vmem>>, %arg7: memref<8x1xf32, #tpu.memory_space<vmem>>, %arg8: memref<1x16x256xf32, #tpu.memory_space<vmem>>) attributes {dimension_semantics = [#tpu.dimension_semantics<parallel>], iteration_bounds = array<i64: 2>, scalar_prefetch = 0 : i64, scratch_operands = 0 : i64, tpu.core_type = #tpu.core_type<tc>, window_params = [{transform_indices = @transform_0, window_bounds = array<i64: 1, 8, 512>}, {pipeline_mode = #tpu.pipeline_mode<synchronous>, transform_indices = @transform_1, window_bounds = array<i64: 3, 256>}, {pipeline_mode = #tpu.pipeline_mode<synchronous>, transform_indices = @transform_2, window_bounds = array<i64: 16, 8>}, {pipeline_mode = #tpu.pipeline_mode<synchronous>, transform_indices = @transform_3, window_bounds = array<i64: 16, 1>}, {pipeline_mode = #tpu.pipeline_mode<synchronous>, transform_indices = @transform_4, window_bounds = array<i64: 16, 9>}, {pipeline_mode = #tpu.pipeline_mode<synchronous>, transform_indices = @transform_5, window_bounds = array<i64: 8, 16>}, {pipeline_mode = #tpu.pipeline_mode<synchronous>, transform_indices = @transform_6, window_bounds = array<i64: 8, 1>}, {transform_indices = @transform_7, window_bounds = array<i64: 1, 16, 256>}]} {
    %c0 = arith.constant 0 : index
    %c0_0 = arith.constant 0 : index
    %0 = vector.load %arg2[%c0, %c0_0] : memref<3x256xf32, #tpu.memory_space<vmem>>, vector<3x256xf32>
    %c0_1 = arith.constant 0 : index
    %c0_2 = arith.constant 0 : index
    %1 = vector.load %arg3[%c0_1, %c0_2] : memref<16x8xf32, #tpu.memory_space<vmem>>, vector<16x8xf32>
    %c0_3 = arith.constant 0 : index
    %c0_4 = arith.constant 0 : index
    %2 = vector.load %arg4[%c0_3, %c0_4] : memref<16x1xf32, #tpu.memory_space<vmem>>, vector<16x1xf32>
    %c0_5 = arith.constant 0 : index
    %c0_6 = arith.constant 0 : index
    %3 = vector.load %arg5[%c0_5, %c0_6] : memref<16x9xf32, #tpu.memory_space<vmem>>, vector<16x9xf32>
    %c0_7 = arith.constant 0 : index
    %c0_8 = arith.constant 0 : index
    %4 = vector.load %arg6[%c0_7, %c0_8] : memref<8x16xf32, #tpu.memory_space<vmem>>, vector<8x16xf32>
    %c0_9 = arith.constant 0 : index
    %c0_10 = arith.constant 0 : index
    %5 = vector.load %arg7[%c0_9, %c0_10] : memref<8x1xf32, #tpu.memory_space<vmem>>, vector<8x1xf32>
    %c0_11 = arith.constant 0 : index
    %c0_12 = arith.constant 0 : index
    %c0_13 = arith.constant 0 : index
    %6 = vector.load %arg1[%c0_11, %c0_12, %c0_13] : memref<1x8x512xf32, #tpu.memory_space<vmem>>, vector<1x8x512xf32>
    %7 = vector.shape_cast %6 : vector<1x8x512xf32> to vector<8x512xf32>
    %8 = vector.extract_strided_slice %7 {offsets = [0, 0], sizes = [8, 256], strides = [1, 1]} : vector<8x512xf32> to vector<8x256xf32>
    %9 = vector.extract_strided_slice %7 {offsets = [0, 256], sizes = [8, 256], strides = [1, 1]} : vector<8x512xf32> to vector<8x256xf32>
    %cst = arith.constant dense<0.000000e+00> : vector<16x256xf32>
    %10 = tpu.matmul %1, %9, %cst {dimension_numbers = #tpu.dot_dimension_numbers<[1], [0], [0], [1], [0, 0, 1, 1], [], []>} : vector<16x8xf32>, vector<8x256xf32>, vector<16x256xf32> -> vector<16x256xf32>
    %11 = vector.broadcast %2 : vector<16x1xf32> to vector<16x256xf32>
    %12 = arith.addf %10, %11 : vector<16x256xf32>
    %cst_14 = arith.constant 0.000000e+00 : f32
    %13 = vector.broadcast %cst_14 : f32 to vector<16x256xf32>
    %14 = arith.maximumf %12, %13 : vector<16x256xf32>
    %cst_15 = arith.constant 0.000000e+00 : f32
    %15 = vector.broadcast %cst_15 : f32 to vector<16x256xf32>
    %cst_16 = arith.constant 0.000000e+00 : f32
    %16 = vector.broadcast %cst_16 : f32 to vector<16x17xf32>
    %17 = vector.extract_strided_slice %14 {offsets = [0, 0], sizes = [16, 239], strides = [1, 1]} : vector<16x256xf32> to vector<16x239xf32>
    %18 = tpu.concatenate %16, %17 in 1 : vector<16x17xf32>, vector<16x239xf32> -> vector<16x256xf32>
    %19 = vector.extract_strided_slice %0 {offsets = [0, 0], sizes = [1, 256], strides = [1, 1]} : vector<3x256xf32> to vector<1x256xf32>
    %20 = vector.broadcast %19 : vector<1x256xf32> to vector<16x256xf32>
    %21 = arith.mulf %18, %20 : vector<16x256xf32>
    %22 = vector.extract_strided_slice %3 {offsets = [0, 0], sizes = [16, 1], strides = [1, 1]} : vector<16x9xf32> to vector<16x1xf32>
    %23 = vector.broadcast %22 : vector<16x1xf32> to vector<16x256xf32>
    %24 = arith.mulf %21, %23 : vector<16x256xf32>
    %25 = arith.addf %15, %24 : vector<16x256xf32>
    %cst_17 = arith.constant 0.000000e+00 : f32
    %26 = vector.broadcast %cst_17 : f32 to vector<16x16xf32>
    %27 = vector.extract_strided_slice %14 {offsets = [0, 0], sizes = [16, 240], strides = [1, 1]} : vector<16x256xf32> to vector<16x240xf32>
    %28 = tpu.concatenate %26, %27 in 1 : vector<16x16xf32>, vector<16x240xf32> -> vector<16x256xf32>
    %29 = vector.extract_strided_slice %3 {offsets = [0, 1], sizes = [16, 1], strides = [1, 1]} : vector<16x9xf32> to vector<16x1xf32>
    %30 = vector.broadcast %29 : vector<16x1xf32> to vector<16x256xf32>
    %31 = arith.mulf %28, %30 : vector<16x256xf32>
    %32 = arith.addf %25, %31 : vector<16x256xf32>
    %cst_18 = arith.constant 0.000000e+00 : f32
    %33 = vector.broadcast %cst_18 : f32 to vector<16x15xf32>
    %34 = vector.extract_strided_slice %14 {offsets = [0, 0], sizes = [16, 241], strides = [1, 1]} : vector<16x256xf32> to vector<16x241xf32>
    %35 = tpu.concatenate %33, %34 in 1 : vector<16x15xf32>, vector<16x241xf32> -> vector<16x256xf32>
    %36 = vector.extract_strided_slice %0 {offsets = [2, 0], sizes = [1, 256], strides = [1, 1]} : vector<3x256xf32> to vector<1x256xf32>
    %37 = vector.broadcast %36 : vector<1x256xf32> to vector<16x256xf32>
    %38 = arith.mulf %35, %37 : vector<16x256xf32>
    %39 = vector.extract_strided_slice %3 {offsets = [0, 2], sizes = [16, 1], strides = [1, 1]} : vector<16x9xf32> to vector<16x1xf32>
    %40 = vector.broadcast %39 : vector<16x1xf32> to vector<16x256xf32>
    %41 = arith.mulf %38, %40 : vector<16x256xf32>
    %42 = arith.addf %32, %41 : vector<16x256xf32>
    %cst_19 = arith.constant 0.000000e+00 : f32
    %43 = vector.broadcast %cst_19 : f32 to vector<16x1xf32>
    %44 = vector.extract_strided_slice %14 {offsets = [0, 0], sizes = [16, 255], strides = [1, 1]} : vector<16x256xf32> to vector<16x255xf32>
    %45 = tpu.concatenate %43, %44 in 1 : vector<16x1xf32>, vector<16x255xf32> -> vector<16x256xf32>
    %46 = vector.extract_strided_slice %0 {offsets = [0, 0], sizes = [1, 256], strides = [1, 1]} : vector<3x256xf32> to vector<1x256xf32>
    %47 = vector.broadcast %46 : vector<1x256xf32> to vector<16x256xf32>
    %48 = arith.mulf %45, %47 : vector<16x256xf32>
    %49 = vector.extract_strided_slice %3 {offsets = [0, 3], sizes = [16, 1], strides = [1, 1]} : vector<16x9xf32> to vector<16x1xf32>
    %50 = vector.broadcast %49 : vector<16x1xf32> to vector<16x256xf32>
    %51 = arith.mulf %48, %50 : vector<16x256xf32>
    %52 = arith.addf %42, %51 : vector<16x256xf32>
    %53 = vector.extract_strided_slice %3 {offsets = [0, 4], sizes = [16, 1], strides = [1, 1]} : vector<16x9xf32> to vector<16x1xf32>
    %54 = vector.broadcast %53 : vector<16x1xf32> to vector<16x256xf32>
    %55 = arith.mulf %14, %54 : vector<16x256xf32>
    %56 = arith.addf %52, %55 : vector<16x256xf32>
    %57 = vector.extract_strided_slice %14 {offsets = [0, 1], sizes = [16, 255], strides = [1, 1]} : vector<16x256xf32> to vector<16x255xf32>
    %cst_20 = arith.constant 0.000000e+00 : f32
    %58 = vector.broadcast %cst_20 : f32 to vector<16x1xf32>
    %59 = tpu.concatenate %57, %58 in 1 : vector<16x255xf32>, vector<16x1xf32> -> vector<16x256xf32>
    %60 = vector.extract_strided_slice %0 {offsets = [2, 0], sizes = [1, 256], strides = [1, 1]} : vector<3x256xf32> to vector<1x256xf32>
    %61 = vector.broadcast %60 : vector<1x256xf32> to vector<16x256xf32>
    %62 = arith.mulf %59, %61 : vector<16x256xf32>
    %63 = vector.extract_strided_slice %3 {offsets = [0, 5], sizes = [16, 1], strides = [1, 1]} : vector<16x9xf32> to vector<16x1xf32>
    %64 = vector.broadcast %63 : vector<16x1xf32> to vector<16x256xf32>
    %65 = arith.mulf %62, %64 : vector<16x256xf32>
    %66 = arith.addf %56, %65 : vector<16x256xf32>
    %67 = vector.extract_strided_slice %14 {offsets = [0, 15], sizes = [16, 241], strides = [1, 1]} : vector<16x256xf32> to vector<16x241xf32>
    %cst_21 = arith.constant 0.000000e+00 : f32
    %68 = vector.broadcast %cst_21 : f32 to vector<16x15xf32>
    %69 = tpu.concatenate %67, %68 in 1 : vector<16x241xf32>, vector<16x15xf32> -> vector<16x256xf32>
    %70 = vector.extract_strided_slice %0 {offsets = [0, 0], sizes = [1, 256], strides = [1, 1]} : vector<3x256xf32> to vector<1x256xf32>
    %71 = vector.broadcast %70 : vector<1x256xf32> to vector<16x256xf32>
    %72 = arith.mulf %69, %71 : vector<16x256xf32>
    %73 = vector.extract_strided_slice %3 {offsets = [0, 6], sizes = [16, 1], strides = [1, 1]} : vector<16x9xf32> to vector<16x1xf32>
    %74 = vector.broadcast %73 : vector<16x1xf32> to vector<16x256xf32>
    %75 = arith.mulf %72, %74 : vector<16x256xf32>
    %76 = arith.addf %66, %75 : vector<16x256xf32>
    %77 = vector.extract_strided_slice %14 {offsets = [0, 16], sizes = [16, 240], strides = [1, 1]} : vector<16x256xf32> to vector<16x240xf32>
    %cst_22 = arith.constant 0.000000e+00 : f32
    %78 = vector.broadcast %cst_22 : f32 to vector<16x16xf32>
    %79 = tpu.concatenate %77, %78 in 1 : vector<16x240xf32>, vector<16x16xf32> -> vector<16x256xf32>
    %80 = vector.extract_strided_slice %3 {offsets = [0, 7], sizes = [16, 1], strides = [1, 1]} : vector<16x9xf32> to vector<16x1xf32>
    %81 = vector.broadcast %80 : vector<16x1xf32> to vector<16x256xf32>
    %82 = arith.mulf %79, %81 : vector<16x256xf32>
    %83 = arith.addf %76, %82 : vector<16x256xf32>
    %84 = vector.extract_strided_slice %14 {offsets = [0, 17], sizes = [16, 239], strides = [1, 1]} : vector<16x256xf32> to vector<16x239xf32>
    %cst_23 = arith.constant 0.000000e+00 : f32
    %85 = vector.broadcast %cst_23 : f32 to vector<16x17xf32>
    %86 = tpu.concatenate %84, %85 in 1 : vector<16x239xf32>, vector<16x17xf32> -> vector<16x256xf32>
    %87 = vector.extract_strided_slice %0 {offsets = [2, 0], sizes = [1, 256], strides = [1, 1]} : vector<3x256xf32> to vector<1x256xf32>
    %88 = vector.broadcast %87 : vector<1x256xf32> to vector<16x256xf32>
    %89 = arith.mulf %86, %88 : vector<16x256xf32>
    %90 = vector.extract_strided_slice %3 {offsets = [0, 8], sizes = [16, 1], strides = [1, 1]} : vector<16x9xf32> to vector<16x1xf32>
    %91 = vector.broadcast %90 : vector<16x1xf32> to vector<16x256xf32>
    %92 = arith.mulf %89, %91 : vector<16x256xf32>
    %93 = arith.addf %83, %92 : vector<16x256xf32>
    %cst_24 = arith.constant dense<0.000000e+00> : vector<8x256xf32>
    %94 = tpu.matmul %4, %93, %cst_24 {dimension_numbers = #tpu.dot_dimension_numbers<[1], [0], [0], [1], [0, 0, 1, 1], [], []>} : vector<8x16xf32>, vector<16x256xf32>, vector<8x256xf32> -> vector<8x256xf32>
    %95 = vector.broadcast %5 : vector<8x1xf32> to vector<8x256xf32>
    %96 = arith.addf %94, %95 : vector<8x256xf32>
    %cst_25 = arith.constant 0.000000e+00 : f32
    %97 = vector.broadcast %cst_25 : f32 to vector<8x256xf32>
    %98 = arith.maximumf %96, %97 : vector<8x256xf32>
    %99 = tpu.concatenate %8, %98 in 0 : vector<8x256xf32>, vector<8x256xf32> -> vector<16x256xf32>
    %c0_26 = arith.constant 0 : index
    %c0_27 = arith.constant 0 : index
    %c0_28 = arith.constant 0 : index
    %100 = vector.load %arg8[%c0_26, %c0_27, %c0_28] : memref<1x16x256xf32, #tpu.memory_space<vmem>>, vector<1x16x256xf32>
    %101 = vector.shape_cast %100 : vector<1x16x256xf32> to vector<16x256xf32>
    %102 = vector.shape_cast %99 : vector<16x256xf32> to vector<1x16x256xf32>
    tpu.vector_store %arg8[%c0_26, %c0_27, %c0_28], %102 {strides = array<i32>} : memref<1x16x256xf32, #tpu.memory_space<vmem>>, vector<1x16x256xf32>,
    return
  }
  func.func @transform_0(%arg0: i32) -> (i32, i32, i32) {
    %c0_i32 = arith.constant 0 : i32
    %c0_i32_0 = arith.constant 0 : i32
    %c0_i32_1 = arith.constant 0 : i32
    return %arg0, %c0_i32, %c0_i32_0 : i32, i32, i32
  }
  func.func @transform_1(%arg0: i32) -> (i32, i32) {
    %c0_i32 = arith.constant 0 : i32
    %c0_i32_0 = arith.constant 0 : i32
    %c0_i32_1 = arith.constant 0 : i32
    return %c0_i32, %c0_i32_0 : i32, i32
  }
  func.func @transform_2(%arg0: i32) -> (i32, i32) {
    %c0_i32 = arith.constant 0 : i32
    %c0_i32_0 = arith.constant 0 : i32
    %c0_i32_1 = arith.constant 0 : i32
    return %c0_i32, %c0_i32_0 : i32, i32
  }
  func.func @transform_3(%arg0: i32) -> (i32, i32) {
    %c0_i32 = arith.constant 0 : i32
    %c0_i32_0 = arith.constant 0 : i32
    %c0_i32_1 = arith.constant 0 : i32
    return %c0_i32, %c0_i32_0 : i32, i32
  }
  func.func @transform_4(%arg0: i32) -> (i32, i32) {
    %c0_i32 = arith.constant 0 : i32
    %c0_i32_0 = arith.constant 0 : i32
    %c0_i32_1 = arith.constant 0 : i32
    return %c0_i32, %c0_i32_0 : i32, i32
  }
  func.func @transform_5(%arg0: i32) -> (i32, i32) {
    %c0_i32 = arith.constant 0 : i32
    %c0_i32_0 = arith.constant 0 : i32
    %c0_i32_1 = arith.constant 0 : i32
    return %c0_i32, %c0_i32_0 : i32, i32
  }
  func.func @transform_6(%arg0: i32) -> (i32, i32) {
    %c0_i32 = arith.constant 0 : i32
    %c0_i32_0 = arith.constant 0 : i32
    %c0_i32_1 = arith.constant 0 : i32
    return %c0_i32, %c0_i32_0 : i32, i32
  }
  func.func @transform_7(%arg0: i32) -> (i32, i32, i32) {
    %c0_i32 = arith.constant 0 : i32
    %c0_i32_0 = arith.constant 0 : i32
    %c0_i32_1 = arith.constant 0 : i32
    return %arg0, %c0_i32, %c0_i32_0 : i32, i32, i32
  }
}

</mosaic_0001>

<bundles_post_ra>
// kernel: squeeze.4
= control target key start
LH: loop header
LB: loop body
LE: loop exit
PB: predicated region body
PF: predicated region fallthrough
CT: control target
= control target key end

     0   :  { %vm15_vm0 = vcmask 130048   ;;  %s59_s0 = inlined_call_operand.vmem [shape: f32[16,3,3], index: 0, kind: input, shape index: {}]   ;;  %s60_s1 = inlined_call_operand.vmem [shape: f32[16,9], index: 1, kind: output, shape index: {}]  }
   0x1   :  { %v27_v0 = vld [vmem:[%s59_s0 + $0x8] sm:$0xf]  ;;  %v28_v1 = vld [vmem:[%s59_s0 + $0x4] sm:$0xf]  ;;  %v12_v2 = vld [vmem:[%s59_s0] sm:$0xf] }
   0x2   :  { %7 = vst [vmem:[#allocation0] sm:$0xf] %v27_v0 }
   0x3   :  { %11 = vst [vmem:[#allocation0 + $0x10] sm:$0xf] %v28_v1 }
   0x4   :  { %13 = vst [vmem:[#allocation0 + $0x8] sm:$0xf] %v12_v2 }
   0x9   :  { %v23_v3 = vld [vmem:[#allocation0] sm:$0x7]  }
   0xa   :  { %v18_v4 = vld [vmem:[#allocation0 + $0x10] sm:$0x7]   ;;  %30 = vst.msk [vmem:[%s60_s1 + $0x6] sm:$0x7] %vm15_vm0, %v23_v3  }
   0xb   :  { %v14_v5 = vld [vmem:[#allocation0 + $0x8] sm:$0x7]   ;;  %29 = vst.msk [vmem:[%s60_s1 + $0x3] sm:$0x7] %vm15_vm0, %v18_v4  }
   0xc   :  { %16 = vst.msk [vmem:[%s60_s1] sm:$0x7] %vm15_vm0, %v14_v5  }

// kernel: tile.26
= control target key start
LH: loop header
LB: loop body
LE: loop exit
PB: predicated region body
PF: predicated region fallthrough
CT: control target
= control target key end

     0   :  { %s28_s0 = inlined_call_operand.vmem [shape: f32[16], index: 0, kind: input, shape index: {}]   ;;  %s29_s1 = inlined_call_operand.vmem [shape: f32[16,16], index: 1, kind: output, shape index: {}]  }
   0x1   :  { %v4_v0 = vld [vmem:[%s28_s0] ss:$0 sm:$0xff] }
   0x2   :  { %5 = vst [vmem:[%s29_s1] sm:$0xff] %v4_v0 }
   0x3   :  { %8 = vst [vmem:[%s29_s1 + $0x8] sm:$0xff] %v4_v0 }

// kernel: tile.29
= control target key start
LH: loop header
LB: loop body
LE: loop exit
PB: predicated region body
PF: predicated region fallthrough
CT: control target
= control target key end

     0   :  { %s7_s6 = smov 3  ;;  %s21_s9 = smov 3  ;;  %vm4_vm0 = vcmask 130048   ;;  %vm11_vm1 = vcmask 1048448   ;;  %vm18_vm2 = vcmask 917248   ;;  %vm25_vm3 = vcmask 786048   ;;  %s129_s0 = inlined_call_operand.vmem [shape: f32[16,16], index: 0, kind: input, shape index: {}]   ;;  %s130_s1 = inlined_call_operand.vmem [shape: f32[1,256], index: 1, kind: output, shape index: {}]  }
   0x1   :  { %v67_v0 = vld [vmem:[%s129_s0 + $0x7] ss:$8 sm:%s7_s6]   ;;  %s82_s10 = smov 112   ;;  %v69_v1 = vld [vmem:[%s129_s0 + $0x5] ss:$8 sm:%s21_s9]   ;;  %s83_s13 = smov 80  }
   0x2   :  { %9 = vrot.lane.b32.xlu0 %v67_v0, %s82_s10  ;;  %23 = vrot.lane.b32.xlu1 %v69_v1, %s83_s13  ;;  %s14_s14 = smov 3  ;;  %s28_s15 = smov 3  ;;  %vm32_vm4 = vcmask 654848   ;;  %vm39_vm5 = vcmask 523648   ;;  %vm46_vm6 = vcmask 392448   ;;  %vm53_vm7 = vcmask 261248  }
   0x3   :  { %s35_s16 = smov 3  ;;  %v68_v3 = vld [vmem:[%s129_s0 + $0x6] ss:$8 sm:%s14_s14]   ;;  %s84_s21 = smov 48   ;;  %v70_v4 = vld [vmem:[%s129_s0 + $0x4] ss:$8 sm:%s28_s15]  }
   0x4   :  { %v71_v2 = vld [vmem:[%s129_s0 + $0x3] ss:$8 sm:%s35_s16]   ;;  %s42_s24 = smov 3  ;;  %s85_s25 = smov 96  }
   0x5   :  { %37 = vrot.lane.b32.xlu2 %v71_v2, %s84_s21  ;;  %s86_s26 = smov 64   ;;  %s49_s27 = smov 3  ;;  %v72_v5 = vld [vmem:[%s129_s0 + $0x2] ss:$8 sm:%s42_s24]  }
   0x6   :  { %v73_v6 = vld [vmem:[%s129_s0 + $0x1] ss:$8 sm:%s49_s27]   ;;  %s87_s3 = smov 32   ;;  %s88_s4 = smov 16  }
   0x7   :  { %s2_s5 = smov 3 }
   0x8   :  { %v3_v7 = vld [vmem:[%s129_s0] ss:$8 sm:%s2_s5]  }
   0x9   :  { %5 = vst.msk [vmem:[#allocation0] ss:$8 sm:$0x3] %vm4_vm0, %v3_v7  }
   0xa   :  { %16 = vrot.lane.b32.xlu0 %v68_v3, %s85_s25  ;;  %30 = vrot.lane.b32.xlu1 %v70_v4, %s86_s26 }
   0xd   :  { %44 = vrot.lane.b32.xlu2 %v72_v5, %s87_s3 }
  0x12   :  { %51 = vrot.lane.b32.xlu0 %v73_v6, %s88_s4 }
  0x5f   :  { %v38_v8 = vpop.permute.xlu2 %37  }
  0x67   :  { %v45_v9 = vpop.permute.xlu2 %44  }
  0x74   :  { %v10_v10 = vpop.permute.xlu0 %9   ;;  %v24_v11 = vpop.permute.xlu1 %23  }
  0x75   :  { %12 = vst.msk [vmem:[#allocation0] ss:$8 sm:$0x3] %vm11_vm1, %v10_v10  }
  0x7c   :  { %v17_v12 = vpop.permute.xlu0 %16   ;;  %v31_v13 = vpop.permute.xlu1 %30  }
  0x7d   :  { %19 = vst.msk [vmem:[#allocation0] ss:$8 sm:$0x3] %vm18_vm2, %v17_v12  }
  0x7e   :  { %26 = vst.msk [vmem:[#allocation0] ss:$8 sm:$0x3] %vm25_vm3, %v24_v11  }
  0x7f   :  { %33 = vst.msk [vmem:[#allocation0] ss:$8 sm:$0x3] %vm32_vm4, %v31_v13  }
  0x80   :  { %40 = vst.msk [vmem:[#allocation0] ss:$8 sm:$0x3] %vm39_vm5, %v38_v8  }
  0x81   :  { %47 = vst.msk [vmem:[#allocation0] ss:$8 sm:$0x3] %vm46_vm6, %v45_v9  }
  0x84   :  { %v52_v14 = vpop.permute.xlu0 %51  }
  0x85   :  { %54 = vst.msk [vmem:[#allocation0] ss:$8 sm:$0x3] %vm53_vm7, %v52_v14  }
  0x8c   :  { %v57_v15 = vld [vmem:[#allocation0] sm:$0x1]  ;;  %v62_v16 = vld [vmem:[#allocation0 + $0x8] sm:$0x1] }
  0x8d   :  { %60 = vst [vmem:[%s130_s1] sm:$0x1] %v57_v15 }
  0x8e   :  { %74 = vst [vmem:[%s130_s1 + $0x1] sm:$0x1] %v62_v16 }

// kernel: shuffle_v2_block.1
= control target key start
LH: loop header
LB: loop body
LE: loop exit
PB: predicated region body
PF: predicated region fallthrough
CT: control target
= control target key end

     0   :  { %s917_s24 = smov 0   ;;  %s1191_s0 = inlined_call_operand.vmem [shape: f32[2,8,512], index: 0, kind: input, shape index: {}]   ;;  %s1192_s1 = inlined_call_operand.vmem [shape: f32[3,256], index: 1, kind: input, shape index: {}]   ;;  %s1193_s2 = inlined_call_operand.vmem [shape: f32[16,8], index: 2, kind: input, shape index: {}]   ;;  %s1194_s3 = inlined_call_operand.vmem [shape: f32[16,1], index: 3, kind: input, shape index: {}]   ;;  %s1195_s4 = inlined_call_operand.vmem [shape: f32[16,9], index: 4, kind: input, shape index: {}]   ;;  %s1196_s5 = inlined_call_operand.vmem [shape: f32[8,16], index: 5, kind: input, shape index: {}]   ;;  %s1197_s6 = inlined_call_operand.vmem [shape: f32[8,1], index: 6, kind: input, shape index: {}]   ;;  %s1198_s7 = inlined_call_operand.vmem [shape: f32[2,16,256], index: 7, kind: output, shape index: {}]  }
   0x1 LB: > { %s791_s25 = sadd.s32 4294967295, %s858_s24   ;;  %p795_p0 = scmp.ge.s32.totalorder %s858_s24, 1  ;;  %s858_s24 = sphi %s917_s24, %s17_s24  }
   0x2   : > { %p237_p1 = scmp.lt.s32.totalorder %s858_s24, 3 }
   0x4   : > { %p238_p2 = pnand %p795_p0, %p237_p1 }
   0x5   : > { %p269_p3 = scmp.lt.s32.totalorder (!%p238_p2), %s791_s25, 1  ;;  %s868_s22 = smov (!%p238_p2), 17  }
   0x6   : > { %241 = sbr.rel (%p238_p2) target bundleno = 510 (0x1fe), region = 48  ;;  %s869_s23 = smov (!%p238_p2), 113  }
   0x7   : > { %s871_s26 = smov (!%p238_p2), 15   ;;  %s872_s27 = smov (!%p238_p2), 112  }
   0x8   : > { %s873_s28 = smov (!%p238_p2), 1   ;;  %s874_s29 = smov (!%p238_p2), 111  }
   0x9   : > { %s875_s30 = smov (!%p238_p2), 127  }
   0xb   : > { %v283_v0 = vld [vmem:[%s1194_s3 + $0x8] sm:$0xff]  ;;  %v860_v1 = vmov 0   ;;  %s1200_s25 = smov (!%p269_p3, %s791_s25), 1  ;;  %v939_v3 = vld [vmem:[%s1195_s4] sm:$0xff]  ;;  %v861_v4 = vmov 2   ;;  %vm302_vm0 = vcmask 64512  }
   0xc   : > { %835 = vset.pattern.permute.xlu0 %v860_v1  ;;  %v932_v2 = vld [vmem:[%s1195_s4 + $0x8] sm:$0xff]  ;;  %836 = vset.pattern.permute.xlu2 %v860_v1  ;;  %s808_s9 = sshll.u32 %s1200_s25, 5  ;;  %v280_v5 = vld [vmem:[%s1193_s2] sm:$0xff]  ;;  %v862_v11 = vmov 1   ;;  %v863_v13 = vmov 3   ;;  %v864_v14 = vmov 5  }
   0xd   : > { %299 = vperm.xlu0 %835, %v283_v0   ;;  %398 = vperm.xlu2 %836, %v932_v2   ;;  %s273_s12 = scalar_lea.vmem %s1191_s0, %s808_s9  ;;  %s948_s15 = scalar_lea.vmem %s1198_s7, %s808_s9  ;;  %v282_v10 = vld [vmem:[%s1194_s3] sm:$0xff]  ;;  %v281_v12 = vld [vmem:[%s1193_s2 + $0x8] sm:$0xff]  ;;  %v865_v15 = vmov 4   ;;  %v866_v16 = vmov 6   ;;  %v867_v17 = vmov 7   ;;  %v876_v33 = vmov 8  }
   0xe   : > { %840 = vset.pattern.permute.xlu1 %v861_v4  ;;  %v288_v6 = vld [vmem:[%s273_s12] sm:$0xff]  ;;  %v289_v7 = vld [vmem:[%s273_s12 + $0x8] sm:$0xff]  ;;  %v290_v8 = vld [vmem:[%s273_s12 + $0x10] sm:$0xff]  ;;  %s870_s25 = smov 16   ;;  %vm371_vm1 = vcmask 138240   ;;  %vm417_vm2 = vcmask 130048  }
   0xf   : > { %470 = vperm.xlu1 %840, %v939_v3   ;;  %324 = vmatpush.msra.mxu0 %v290_v8  ;;  %732 = vst [vmem:[%s948_s15] sm:$0xff] %v288_v6  ;;  %v291_v9 = vld [vmem:[%s273_s12 + $0x18] sm:$0xff]  ;;  %v279_v53 = vld [vmem:[%s1192_s1] sm:$0x77]  ;;  %vm450_vm3 = vcmask 121856   ;;  %vm546_vm4 = vcmask 1039360   ;;  %vm493_vm5 = vcmask 7168  }
  0x10   : > { %733 = vst [vmem:[%s948_s15 + $0x8] sm:$0xff] %v289_v7  ;;  %347 = vmatpush.msra.mxu1 %v291_v9  ;;  %800 = vmatmul.msk.f32.vlgmr.msra.gmra.mxu0 %vm302_vm0, %v280_v5  ;;  %v381_v55 = vperm.slane %v279_v53, 0  ;;  %v382_v56 = vperm.slane %v279_v53, 4  ;;  %v460_v9 = vperm.slane %v279_v53, 6  ;;  %vm583_vm6 = vcmask 924672  }
  0x11   : > { %802 = vmatmul.msk.f32.vlgmr.msra.gmra.mxu1 %vm302_vm0, %v280_v5  ;;  %vm653_vm7 = vcmask 908288   ;;  %vm620_vm8 = vcmask 916480  }
  0x12   : > { %v1067_v59 = vperm.slane %v381_v55, 0  ;;  %v1070_v61 = vperm.slane %v382_v56, 0 }
  0x15   : > { %294 = vperm.xlu0 %835, %v282_v10   ;;  %838 = vset.pattern.permute.xlu2 %v862_v11 }
  0x16   : > { %427 = vperm.xlu2 %838, %v939_v3  }
  0x17   : > { %843 = vset.pattern.permute.xlu1 %v864_v14  ;;  %v1080_v14 = vperm.slane %v460_v9, 2 }
  0x18   : > { %801 = vmatmul.msk.f32.gmra.mxu0 %vm302_vm0, %v281_v12  ;;  %564 = vperm.xlu1 %843, %v932_v2  }
  0x19   : > { %803 = vmatmul.msk.f32.gmra.mxu1 %vm302_vm0, %v281_v12  ;;  %v459_v12 = vperm.slane %v279_v53, 2 }
  0x1d   : > { %393 = vperm.xlu0 %835, %v939_v3  }
  0x1e   : > { %841 = vset.pattern.permute.xlu2 %v863_v13 }
  0x1f   : > { %511 = vperm.xlu2 %841, %v932_v2  }
  0x20   : > { %560 = vperm.xlu1 %843, %v939_v3  }
  0x25   : > { %837 = vset.pattern.permute.xlu0 %v862_v11 }
  0x26   : > { %431 = vperm.xlu0 %837, %v932_v2  }
  0x27   : > { %507 = vperm.xlu2 %841, %v939_v3  }
  0x28   : > { %845 = vset.pattern.permute.xlu1 %v866_v16 }
  0x29   : > { %597 = vperm.xlu1 %845, %v939_v3  }
  0x2e   : > { %839 = vset.pattern.permute.xlu0 %v861_v4 }
  0x2f   : > { %474 = vperm.xlu0 %839, %v932_v2   ;;  %844 = vset.pattern.permute.xlu2 %v866_v16 }
  0x30   : > { %601 = vperm.xlu2 %844, %v932_v2  }
  0x31   : > { %847 = vset.pattern.permute.xlu1 %v867_v17 }
  0x37   : > { %842 = vset.pattern.permute.xlu0 %v865_v15  ;;  %v1082_v15 = vperm.slane %v459_v12, 2 }
  0x38   : > { %527 = vperm.xlu0 %842, %v932_v2   ;;  %846 = vset.pattern.permute.xlu2 %v867_v17 }
  0x39   : > { %634 = vperm.xlu2 %846, %v932_v2  }
  0x40   : > { %523 = vperm.xlu0 %842, %v939_v3  }
  0x41   : > { %848 = vset.pattern.permute.xlu2 %v876_v33 }
  0x48   : > { %849 = vset.pattern.permute.xlu0 %v876_v33 }
  0x67   : > { %v1010_v37 = vpop.permute.xlu2 %398 }
  0x70   : > { %v428_v39 = vpop.permute.xlu2 %427 }
  0x79   : > { %v1028_v42 = vpop.permute.xlu2 %511 }
  0x7f   : > { %v300_v18 = vpop.permute.xlu0 %299 }
  0x81   : > { %v1035_v43 = vpop.permute.xlu2 %507  ;;  %v471_v44 = vpop.permute.xlu1 %470 }
  0x87   : > { %v295_v19 = vpop.permute.xlu0 %294 }
  0x8a   : > { %v1042_v45 = vpop.permute.xlu2 %601  ;;  %v1048_v46 = vpop.permute.xlu1 %564 }
  0x8d   : > { %v326_v21 = vpop.f32.mrf.mxu0 }
  0x8e   : > { %v327_v22 = vadd.f32 %v326_v21, %v295_v19  ;;  %v349_v23 = vpop.f32.mrf.mxu1 }
  0x8f   : > { %v978_v20 = vpop.permute.xlu0 %393  ;;  %v350_v24 = vadd.f32 %v349_v23, %v295_v19 }
  0x90   : > { %v355_v25 = vmax.f32 %v327_v22, 0.0 }
  0x91   : > { %v356_v26 = vmax.f32 %v350_v24, 0.0 }
  0x92   : > { %363 = vrot.lane.b32.xlu1 %v355_v25, %s868_s22  ;;  %v1055_v48 = vpop.permute.xlu1 %560 }
  0x93   : > { %577 = vrot.lane.b32.xlu0 %v356_v26, %s869_s23  ;;  %411 = vrot.lane.b32.xlu2 %v356_v26, %s870_s25  ;;  %v1053_v47 = vpop.permute.xlu2 %634 }
  0x95   : > { %v329_v29 = vpop.f32.mrf.mxu0 }
  0x96   : > { %v330_v30 = vadd.f32 %v329_v29, %v300_v18  ;;  %v352_v38 = vpop.f32.mrf.mxu1 }
  0x97   : > { %v353_v40 = vadd.f32 %v352_v38, %v300_v18 }
  0x98   : > { %v983_v27 = vpop.permute.xlu0 %431  ;;  %v995_v32 = vmax.f32 %v330_v30, 0.0 }
  0x99   : > { %v1020_v41 = vmax.f32 %v353_v40, 0.0 }
  0x9a   : > { %365 = vrot.lane.b32.xlu1 %v356_v26, %s868_s22 }
  0x9b   : > { %444 = vrot.lane.b32.xlu2 %v356_v26, %s871_s26  ;;  %612 = vrot.lane.b32.xlu0 %v355_v25, %s872_s27  ;;  %v1060_v50 = vpop.permute.xlu1 %597 }
  0xa1   : > { %v988_v28 = vpop.permute.xlu0 %474 }
  0xa2   : > { %409 = vrot.lane.b32.xlu1 %v355_v25, %s870_s25 }
  0xa3   : > { %487 = vrot.lane.b32.xlu2 %v356_v26, %s873_s28  ;;  %647 = vrot.lane.b32.xlu0 %v356_v26, %s874_s29 }
  0xaa   : > { %v993_v31 = vpop.permute.xlu0 %527  ;;  %442 = vrot.lane.b32.xlu1 %v355_v25, %s871_s26 }
  0xab   : > { %540 = vrot.lane.b32.xlu2 %v356_v26, %s875_s30  ;;  %446 = vrot.lane.b32.xlu0 %v995_v32, %s871_s26 }
  0xb2   : > { %v524_v34 = vpop.permute.xlu0 %523  ;;  %485 = vrot.lane.b32.xlu1 %v355_v25, %s873_s28 }
  0xb3   : > { %v1001_v35 = vmul.f32 %v524_v34, %v355_v25  ;;  %v1003_v36 = vmul.f32 %v524_v34, %v356_v26  ;;  %489 = vrot.lane.b32.xlu0 %v995_v32, %s873_s28  ;;  %575 = vrot.lane.b32.xlu2 %v355_v25, %s869_s23 }
  0xba   : > { %538 = vrot.lane.b32.xlu1 %v355_v25, %s875_s30 }
  0xbb   : > { %542 = vrot.lane.b32.xlu0 %v995_v32, %s875_s30  ;;  %645 = vrot.lane.b32.xlu2 %v355_v25, %s874_s29 }
  0xc2   : > { %614 = vrot.lane.b32.xlu1 %v356_v26, %s872_s27 }
  0xc3   : > { %616 = vrot.lane.b32.xlu0 %v995_v32, %s872_s27  ;;  %367 = vrot.lane.b32.xlu2 %v995_v32, %s868_s22 }
  0xca   : > { %413 = vrot.lane.b32.xlu1 %v995_v32, %s870_s25 }
  0xcb   : > { %651 = vrot.lane.b32.xlu0 %v1020_v41, %s874_s29  ;;  %369 = vrot.lane.b32.xlu2 %v1020_v41, %s868_s22 }
  0xd2   : > { %448 = vrot.lane.b32.xlu1 %v1020_v41, %s871_s26 }
  0xd3   : > { %667 = vperm.xlu0 %849, %v939_v3   ;;  %415 = vrot.lane.b32.xlu2 %v1020_v41, %s870_s25 }
  0xda   : > { %491 = vrot.lane.b32.xlu1 %v1020_v41, %s873_s28 }
  0xdb   : > { %581 = vrot.lane.b32.xlu2 %v1020_v41, %s869_s23  ;;  %851 = vset.pattern.permute.xlu0 %v860_v1 }
  0xe2   : > { %544 = vrot.lane.b32.xlu1 %v1020_v41, %s875_s30 }
  0xe3   : > { %649 = vrot.lane.b32.xlu2 %v995_v32, %s874_s29 }
  0xea   : > { %579 = vrot.lane.b32.xlu1 %v995_v32, %s869_s23 }
  0xeb   : > { %671 = vperm.xlu2 %848, %v932_v2  }
  0xed   : > { %v412_v49 = vpop.permute.xlu2 %411 }
  0xf2   : > { %618 = vrot.lane.b32.xlu1 %v1020_v41, %s872_s27 }
  0xf5   : > { %v445_v51 = vpop.permute.xlu2 %444 }
  0xfa   : > { %630 = vperm.xlu1 %847, %v939_v3  }
  0xfd   : > { %v488_v54 = vpop.permute.xlu2 %487 }
 0x102   : > { %850 = vset.pattern.permute.xlu1 %v860_v1 }
 0x104   : > { %v364_v52 = vpop.permute.xlu1 %363 }
 0x105   : > { %v378_v60 = vsel %vm371_vm1, 0.0, %v364_v52  ;;  %v578_v62 = vpop.permute.xlu0 %577  ;;  %v541_v1 = vpop.permute.xlu2 %540 }
 0x106   : > { %v387_v63 = vmul.f32 %v1067_v59, %v378_v60  ;;  %v553_v30 = vsel %vm546_vm4, %v541_v1, 0.0  ;;  %v590_v40 = vsel %vm583_vm6, %v578_v62, 0.0 }
 0x107   : > { %v593_v53 = vmul.f32 %v590_v40, %v1070_v61 }
 0x108   : > { %v401_v5 = vmul.f32 %v978_v20, %v387_v63 }
 0x10c   : > { %v366_v57 = vpop.permute.xlu1 %365 }
 0x10d   : > { %v372_v58 = vsel %vm371_vm1, %v364_v52, %v366_v57  ;;  %v1078_v13 = vpop.permute.xlu0 %612  ;;  %v576_v19 = vpop.permute.xlu2 %575 }
 0x10e   : > { %v388_v0 = vmul.f32 %v1070_v61, %v372_v58  ;;  %v584_v56 = vsel %vm583_vm6, %v576_v19, %v578_v62 }
 0x110   : > { %v402_v6 = vmul.f32 %v978_v20, %v388_v0 }
 0x114   : > { %v410_v2 = vpop.permute.xlu1 %409 }
 0x115   : > { %v418_v3 = vsel %vm417_vm2, %v410_v2, %v412_v49  ;;  %v424_v4 = vsel %vm417_vm2, 0.0, %v410_v2  ;;  %v1088_v26 = vpop.permute.xlu0 %647  ;;  %v1097_v49 = vpop.permute.xlu2 %645  ;;  %v605_v2 = vmul.f32 %v1060_v50, %v593_v53 }
 0x116   : > { %v434_v7 = vmul.f32 %v428_v39, %v424_v4  ;;  %v435_v8 = vmul.f32 %v428_v39, %v418_v3  ;;  %v592_v3 = vmul.f32 %v584_v56, %v1067_v59 }
 0x118   : > { %v438_v10 = vadd.f32 %v434_v7, %v401_v5  ;;  %v439_v11 = vadd.f32 %v435_v8, %v402_v6  ;;  %v604_v7 = vmul.f32 %v1060_v50, %v592_v3  ;;  %v533_v3 = vmul.f32 %v993_v31, %v1020_v41 }
 0x11c   : > { %v443_v16 = vpop.permute.xlu1 %442 }
 0x11d   : > { %v451_v17 = vsel %vm450_vm3, %v443_v16, %v445_v51  ;;  %v457_v18 = vsel %vm450_vm3, 0.0, %v443_v16 }
 0x11e   : > { %v465_v20 = vmul.f32 %v1082_v15, %v457_v18  ;;  %v466_v21 = vmul.f32 %v1080_v14, %v451_v17 }
 0x120   : > { %v477_v22 = vmul.f32 %v471_v44, %v465_v20  ;;  %v478_v23 = vmul.f32 %v471_v44, %v466_v21  ;;  %v556_v44 = vmul.f32 %v553_v30, %v1080_v14 }
 0x122   : > { %v481_v24 = vadd.f32 %v477_v22, %v438_v10  ;;  %v482_v25 = vadd.f32 %v478_v23, %v439_v11  ;;  %v568_v57 = vmul.f32 %v1055_v48, %v556_v44 }
 0x124   : > { %v486_v29 = vpop.permute.xlu1 %485 }
 0x125   : > { %v494_v33 = vsel %vm493_vm5, %v486_v29, %v488_v54  ;;  %v500_v34 = vsel %vm493_vm5, 0.0, %v486_v29 }
 0x126   : > { %v502_v38 = vmul.f32 %v500_v34, %v1067_v59  ;;  %v503_v39 = vmul.f32 %v494_v33, %v1070_v61  ;;  %v532_v33 = vmul.f32 %v993_v31, %v995_v32 }
 0x128   : > { %v514_v51 = vmul.f32 %v1035_v43, %v502_v38  ;;  %v515_v52 = vmul.f32 %v1035_v43, %v503_v39  ;;  %v447_v43 = vpop.permute.xlu0 %446 }
 0x129   : > { %v458_v11 = vsel %vm450_vm3, 0.0, %v447_v43 }
 0x12a   : > { %v518_v55 = vadd.f32 %v514_v51, %v481_v24  ;;  %v519_v54 = vadd.f32 %v515_v52, %v482_v25 }
 0x12c   : > { %v535_v58 = vadd.f32 %v1003_v36, %v519_v54  ;;  %v539_v60 = vpop.permute.xlu1 %538  ;;  %v534_v63 = vadd.f32 %v1001_v35, %v518_v55  ;;  %v368_v36 = vpop.permute.xlu2 %367 }
 0x12d   : > { %v547_v0 = vsel %vm546_vm4, %v539_v60, %v541_v1  ;;  %v379_v1 = vsel %vm371_vm1, 0.0, %v368_v36 }
 0x12e   : > { %v555_v4 = vmul.f32 %v547_v0, %v1082_v15  ;;  %v572_v5 = vadd.f32 %v568_v57, %v535_v58  ;;  %v389_v12 = vmul.f32 %v1067_v59, %v379_v1 }
 0x130   : > { %v567_v6 = vmul.f32 %v1055_v48, %v555_v4  ;;  %v1111_v62 = vadd.f32 %v605_v2, %v572_v5  ;;  %v490_v10 = vpop.permute.xlu0 %489  ;;  %v467_v48 = vmul.f32 %v1082_v15, %v458_v11  ;;  %v403_v19 = vmul.f32 %v1010_v37, %v389_v12 }
 0x131   : > { %v501_v16 = vsel %vm493_vm5, 0.0, %v490_v10 }
 0x132   : > { %v571_v8 = vadd.f32 %v567_v6, %v534_v63  ;;  %v504_v20 = vmul.f32 %v501_v16, %v1067_v59  ;;  %v479_v22 = vmul.f32 %v988_v28, %v467_v48 }
 0x134   : > { %v1114_v9 = vpop.permute.xlu1 %614  ;;  %v1116_v35 = vadd.f32 %v604_v7, %v571_v8  ;;  %v370_v17 = vpop.permute.xlu2 %369  ;;  %v516_v24 = vmul.f32 %v1028_v42, %v504_v20 }
 0x135   : > { %v373_v34 = vsel %vm371_vm1, %v368_v36, %v370_v17 }
 0x136   : > { %v390_v51 = vmul.f32 %v1070_v61, %v373_v34 }
 0x138   : > { %v543_v55 = vpop.permute.xlu0 %542  ;;  %v404_v54 = vmul.f32 %v1010_v37, %v390_v51 }
 0x13c   : > { %v414_v18 = vpop.permute.xlu1 %413  ;;  %v416_v39 = vpop.permute.xlu2 %415 }
 0x13d   : > { %v425_v50 = vsel %vm417_vm2, 0.0, %v414_v18  ;;  %v419_v40 = vsel %vm417_vm2, %v414_v18, %v416_v39  ;;  %v660_v39 = vsel %vm653_vm7, %v1088_v26, 0.0 }
 0x13e   : > { %v436_v21 = vmul.f32 %v983_v27, %v425_v50  ;;  %v437_v53 = vmul.f32 %v983_v27, %v419_v40  ;;  %v654_v40 = vsel %vm653_vm7, %v1097_v49, %v1088_v26 }
 0x140   : > { %v440_v23 = vadd.f32 %v436_v21, %v403_v19  ;;  %v441_v58 = vadd.f32 %v437_v53, %v404_v54  ;;  %v617_v37 = vpop.permute.xlu0 %616  ;;  %v663_v54 = vmul.f32 %v660_v39, %v1080_v14 }
 0x142   : > { %v483_v25 = vadd.f32 %v479_v22, %v440_v23 }
 0x144   : > { %v520_v29 = vadd.f32 %v516_v24, %v483_v25  ;;  %v449_v30 = vpop.permute.xlu1 %448  ;;  %v582_v2 = vpop.permute.xlu2 %581 }
 0x145   : > { %v452_v38 = vsel %vm450_vm3, %v447_v43, %v449_v30  ;;  %v591_v31 = vsel %vm583_vm6, %v582_v2, 0.0 }
 0x146   : > { %v536_v44 = vadd.f32 %v532_v33, %v520_v29  ;;  %v468_v52 = vmul.f32 %v1080_v14, %v452_v38  ;;  %v595_v12 = vmul.f32 %v591_v31, %v1070_v61 }
 0x148   : > { %v480_v56 = vmul.f32 %v988_v28, %v468_v52  ;;  %v287_v28 = vld [vmem:[%s1197_s6] sm:$0xff]  ;;  %v652_v11 = vpop.permute.xlu0 %651  ;;  %v607_v19 = vmul.f32 %v1042_v45, %v595_v12  ;;  %v621_v52 = vsel %vm620_vm8, %v1078_v13, %v1114_v9 }
 0x149   : > { %684 = vperm.xlu1 %850, %v287_v28   ;;  %v661_v48 = vsel %vm653_vm7, %v652_v11, 0.0 }
 0x14a   : > { %v484_v63 = vadd.f32 %v480_v56, %v441_v58  ;;  %v665_v22 = vmul.f32 %v661_v48, %v1080_v14  ;;  %v662_v56 = vmul.f32 %v654_v40, %v1082_v15 }
 0x14c   : > { %v492_v32 = vpop.permute.xlu1 %491 }
 0x14d   : > { %v495_v57 = vsel %vm493_vm5, %v490_v10, %v492_v32 }
 0x14e   : > { %v505_v60 = vmul.f32 %v495_v57, %v1070_v61 }
 0x150   : > { %v517_v0 = vmul.f32 %v1028_v42, %v505_v60  ;;  %v650_v42 = vpop.permute.xlu2 %649  ;;  %v668_v53 = vpop.permute.xlu0 %667 }
 0x151   : > { %v655_v17 = vsel %vm653_vm7, %v650_v42, %v652_v11  ;;  %v674_v26 = vmul.f32 %v668_v53, %v662_v56  ;;  %v675_v49 = vmul.f32 %v668_v53, %v663_v54 }
 0x152   : > { %v521_v43 = vadd.f32 %v517_v0, %v484_v63  ;;  %v286_v63 = vld [vmem:[%s1196_s5] sm:$0xff] }
 0x154   : > { %v545_v27 = vpop.permute.xlu1 %544  ;;  %v537_v4 = vadd.f32 %v533_v3, %v521_v43 }
 0x155   : > { %v554_v5 = vsel %vm546_vm4, %v545_v27, 0.0  ;;  %v548_v6 = vsel %vm546_vm4, %v543_v55, %v545_v27 }
 0x156   : > { %v558_v7 = vmul.f32 %v554_v5, %v1080_v14  ;;  %v557_v36 = vmul.f32 %v548_v6, %v1082_v15 }
 0x158   : > { %v570_v1 = vmul.f32 %v1048_v46, %v558_v7  ;;  %v569_v16 = vmul.f32 %v1048_v46, %v557_v36  ;;  %v672_v61 = vpop.permute.xlu2 %671 }
 0x15a   : > { %v574_v50 = vadd.f32 %v570_v1, %v537_v4  ;;  %v573_v21 = vadd.f32 %v569_v16, %v536_v44 }
 0x15c   : > { %v580_v8 = vpop.permute.xlu1 %579  ;;  %v611_v30 = vadd.f32 %v607_v19, %v574_v50 }
 0x15d   : > { %v585_v41 = vsel %vm583_vm6, %v580_v8, %v582_v2 }
 0x15e   : > { %v594_v10 = vmul.f32 %v585_v41, %v1067_v59  ;;  %v664_v59 = vmul.f32 %v655_v17, %v1082_v15 }
 0x160   : > { %v606_v18 = vmul.f32 %v1042_v45, %v594_v10  ;;  %v676_v33 = vmul.f32 %v672_v61, %v664_v59  ;;  %v677_v45 = vmul.f32 %v672_v61, %v665_v22 }
 0x162   : > { %v610_v29 = vadd.f32 %v606_v18, %v573_v21 }
 0x164   : > { %v619_v20 = vpop.permute.xlu1 %618 }
 0x165   : > { %v622_v46 = vsel %vm620_vm8, %v617_v37, %v619_v20  ;;  %v628_v23 = vsel %vm620_vm8, %v619_v20, 0.0 }
 0x166   : > { %v639_v24 = vmul.f32 %v1053_v47, %v622_v46  ;;  %v640_v25 = vmul.f32 %v1053_v47, %v628_v23  ;;  %v627_v47 = vsel %vm620_vm8, %v1114_v9, 0.0 }
 0x168   : > { %v643_v34 = vadd.f32 %v639_v24, %v610_v29  ;;  %v644_v38 = vadd.f32 %v640_v25, %v611_v30 }
 0x16a   : > { %v680_v44 = vadd.f32 %v676_v33, %v643_v34  ;;  %v681_v51 = vadd.f32 %v677_v45, %v644_v38 }
 0x16c   : > { %704 = vmatpush.msra.mxu2 %v680_v44  ;;  %724 = vmatpush.msra.mxu3 %v681_v51  ;;  %v631_v55 = vpop.permute.xlu1 %630 }
 0x16d   : > { %v637_v32 = vmul.f32 %v631_v55, %v621_v52  ;;  %v638_v57 = vmul.f32 %v631_v55, %v627_v47 }
 0x16f   : > { %v641_v58 = vadd.f32 %v637_v32, %v1116_v35  ;;  %v642_v13 = vadd.f32 %v638_v57, %v1111_v62 }
 0x171   : > { %v678_v60 = vadd.f32 %v674_v26, %v641_v58  ;;  %v679_v9 = vadd.f32 %v675_v49, %v642_v13 }
 0x173   : > { %705 = vmatpush.msra.mxu2 %v678_v60  ;;  %725 = vmatpush.msra.mxu3 %v679_v9 }
 0x174   : > { %804 = vmatmul.msk.f32.vlgmr.msra.gmra.mxu2 %vm417_vm2, %v286_v63  ;;  %805 = vmatmul.msk.f32.vlgmr.msra.gmra.mxu3 %vm417_vm2, %v286_v63 }
 0x1bb   : > { %v685_v14 = vpop.permute.xlu1 %684 }
 0x1f7   : > { %v727_v15 = vpop.f32.mrf.mxu3  ;;  %v707_v0 = vpop.f32.mrf.mxu2 }
 0x1f8   : > { %v728_v35 = vadd.f32 %v727_v15, %v685_v14  ;;  %v708_v2 = vadd.f32 %v707_v0, %v685_v14 }
 0x1fa   : > { %v731_v3 = vmax.f32 %v728_v35, 0.0  ;;  %v730_v62 = vmax.f32 %v708_v2, 0.0 }
 0x1fc   : > { %735 = vst [vmem:[%s948_s15 + $0x18] sm:$0xff] %v731_v3 }
 0x1fd   : > { %734 = vst [vmem:[%s948_s15 + $0x10] sm:$0xff] %v730_v62 }
 0x1fe PF: > { %s17_s24 = sadd.s32 1, %s858_s24  }
 0x1ff   : > { %p14_p4 = scmp.ge.s32.totalorder %s17_s24, 4  }
 0x201   :  { %16 = sbr.rel (!%p14_p4) target bundleno = 1 (0x1), region = 78 }

</bundles_post_ra>
